<compile_context>
chip_gen: v6e
topology: v6e:2x2x1
jax: 0.10.0
libtpu: 0.0.40
codegen_flags: <defaults>
</compile_context>

<pallas_src>
import functools

import jax
import jax.numpy as jnp
from jax import lax
from jax.experimental import pallas as pl
from jax.experimental.pallas import tpu as pltpu


# ---------------------------------------------------------------------------
# In-kernel math helpers (only ops with guaranteed Mosaic lowering).
# ---------------------------------------------------------------------------
def _erf_approx(x):
    """Abramowitz & Stegun 7.1.26 rational approximation, |err| <= 1.5e-7."""
    a1, a2, a3, a4, a5 = (0.254829592, -0.284496736, 1.421413741,
                          -1.453152027, 1.061405429)
    p = 0.3275911
    ax = jnp.abs(x)
    t = 1.0 / (1.0 + p * ax)
    poly = ((((a5 * t + a4) * t + a3) * t + a2) * t + a1) * t
    y = 1.0 - poly * jnp.exp(-(ax * ax))
    return jnp.where(x >= 0, y, -y)


def _gelu_exact(x):
    """PyTorch nn.GELU() default: 0.5 * x * (1 + erf(x / sqrt(2)))."""
    return 0.5 * x * (1.0 + _erf_approx(x * 0.7071067811865476))


# ---------------------------------------------------------------------------
# Fused conv1d + bias + activation (+ residual) kernel.  One program = one
# batch element; the whole (C, L) slab is processed with K MXU matmuls.
# ---------------------------------------------------------------------------
def _conv1d_act_kernel(xp_ref, w_ref, b_ref, *rest, kernel_size, dilation,
                       activation, add_residual):
    if add_residual:
        res_ref, o_ref = rest
    else:
        (o_ref,) = rest

    c_out, l_out = o_ref.shape[1], o_ref.shape[2]

    xp = xp_ref[0].astype(jnp.float32)                      # (C_in, L_pad)
    acc = jnp.zeros((c_out, l_out), jnp.float32)
    for k in range(kernel_size):                            # static unroll (K small)
        off = k * dilation
        x_k = lax.slice_in_dim(xp, off, off + l_out, axis=1)  # (C_in, L_out)
        w_k = w_ref[k].astype(jnp.float32)                    # (C_out, C_in)
        acc = acc + jnp.dot(w_k, x_k, preferred_element_type=jnp.float32)

    acc = acc + b_ref[...].astype(jnp.float32)              # (C_out, 1) broadcast

    if activation == "gelu":
        acc = _gelu_exact(acc)
    elif activation == "relu":
        acc = jnp.maximum(acc, 0.0)
    # else: no activation layer (matches the PyTorch module)
    # Dropout: inference-mode identity.

    if add_residual:
        acc = acc + res_ref[0].astype(jnp.float32)

    o_ref[0] = acc.astype(o_ref.dtype)                      # single lane-dense store


def _conv1d_layer(x, w, b, residual, *, kernel_size, padding, stride, dilation,
                  activation):
    """One Conv1d(+bias)+activation(+optional residual) layer via pallas_call."""
    assert stride == 1, "only stride=1 implemented"  # TODO(synk): general stride
    B, C_in, L = x.shape
    C_out, C_in_w, K = w.shape
    assert C_in_w == C_in and K == kernel_size

    L_pad = L + 2 * padding
    L_out = L_pad - dilation * (kernel_size - 1)
    xp = jnp.pad(x, ((0, 0), (0, 0), (padding, padding)))
    w_t = jnp.transpose(w, (2, 0, 1))                  # (K, C_out, C_in)
    b2 = b.reshape(C_out, 1)

    add_residual = residual is not None
    if add_residual:
        assert residual.shape == (B, C_out, L_out)

    kernel = functools.partial(
        _conv1d_act_kernel,
        kernel_size=kernel_size,
        dilation=dilation,
        activation=activation,
        add_residual=add_residual,
    )

    in_specs = [
        pl.BlockSpec((1, C_in, L_pad), lambda bi: (bi, 0, 0)),
        pl.BlockSpec((kernel_size, C_out, C_in), lambda bi: (0, 0, 0)),
        pl.BlockSpec((C_out, 1), lambda bi: (0, 0)),
    ]
    operands = [xp, w_t, b2]
    if add_residual:
        in_specs.append(pl.BlockSpec((1, C_out, L_out), lambda bi: (bi, 0, 0)))
        operands.append(residual)

    return pl.pallas_call(
        kernel,
        out_shape=jax.ShapeDtypeStruct((B, C_out, L_out), x.dtype),
        grid=(B,),
        in_specs=in_specs,
        out_specs=pl.BlockSpec((1, C_out, L_out), lambda bi: (bi, 0, 0)),
        compiler_params=pltpu.CompilerParams(
            dimension_semantics=("parallel",)),   # v7x: shard batch over 2 TCs
    )(*operands)


def convolution_language_block(x, weights, biases, *, kernel_size, padding,
                               stride=1, dilation=1, activation="gelu",
                               batchnorm=False, dropout=0.1):
    """Forward pass of ConvolutionLanguageBlock (inference mode)."""
    # TODO(synk): batchnorm=True (nn.BatchNorm1d) not implemented; the module's
    # default is batchnorm=False.  Dropout is an inference-mode identity.
    assert not batchnorm, "batchnorm=True not implemented"
    del dropout

    residual = x if x.shape[1] == weights[0].shape[1] else None
    y = x
    n_layers = len(weights)
    for li in range(n_layers):
        is_last = li == n_layers - 1
        fuse_res = is_last and (residual is not None)
        if fuse_res:
            # Matches PyTorch: the residual add would error on shape mismatch.
            assert weights[li].shape[0] == residual.shape[1]
        y = _conv1d_layer(
            y, weights[li], biases[li], residual if fuse_res else None,
            kernel_size=kernel_size, padding=padding, stride=stride,
            dilation=dilation, activation=activation)
    return y


# ---------------------------------------------------------------------------
# Pure-JAX reference (exact GELU, HIGHEST-precision conv) for validation.
# ---------------------------------------------------------------------------
def _reference_block(x, weights, biases, *, kernel_size, padding, stride=1,
                     dilation=1, activation="gelu"):
    residual = x if x.shape[1] == weights[0].shape[1] else None
    y = x
    for w, b in zip(weights, biases):
        y = lax.conv_general_dilated(
            y, w, window_strides=(stride,), padding=[(padding, padding)],
            rhs_dilation=(dilation,), dimension_numbers=("NCH", "OIH", "NCH"),
            precision=lax.Precision.HIGHEST)
        y = y + b[None, :, None]
        if activation == "gelu":
            y = jax.nn.gelu(y, approximate=False)
        elif activation == "relu":
            y = jax.nn.relu(y)
    if residual is not None:
        y = y + residual
    return y


if __name__ == "__main__":
    key = jax.random.PRNGKey(0)
    B, C, L = 2, 32, 128          # batch, channels, seq (lane-dense: L % 128 == 0)
    K, padding = 3, 1

    kx, kw1, kb1, kw2, kb2 = jax.random.split(key, 5)
    x = jax.random.normal(kx, (B, C, L), jnp.float32)
    bound = 1.0 / (C * K) ** 0.5  # PyTorch Conv1d default init scale
    w1 = jax.random.uniform(kw1, (C, C, K), jnp.float32, -bound, bound)
    b1 = jax.random.uniform(kb1, (C,), jnp.float32, -bound, bound)
    w2 = jax.random.uniform(kw2, (C, C, K), jnp.float32, -bound, bound)
    b2 = jax.random.uniform(kb2, (C,), jnp.float32, -bound, bound)

    # depth = 1 (module default)
    out1 = jax.block_until_ready(
        convolution_language_block(x, [w1], [b1], kernel_size=K, padding=padding))
    ref1 = _reference_block(x, [w1], [b1], kernel_size=K, padding=padding)
    assert out1.shape == (B, C, L) and out1.dtype == jnp.float32
    assert jnp.allclose(out1, ref1, atol=2e-3, rtol=2e-3), float(
        jnp.max(jnp.abs(out1 - ref1)))

    # depth = 2 (exercises the multi-layer path; residual fused in last layer)
    out2 = jax.block_until_ready(
        convolution_language_block(x, [w1, w2], [b1, b2],
                                   kernel_size=K, padding=padding))
    ref2 = _reference_block(x, [w1, w2], [b1, b2], kernel_size=K, padding=padding)
    assert jnp.allclose(out2, ref2, atol=2e-3, rtol=2e-3), float(
        jnp.max(jnp.abs(out2 - ref2)))

    print("KERNEL_OK")
</pallas_src>

<mosaic_0001>
module attributes {stable_mosaic.version = 11 : i64} {
  func.func @_conv1d_act_kernel(%arg0: i32, %arg1: memref<1x32x130xf32, #tpu.memory_space<vmem>>, %arg2: memref<3x32x32xf32, #tpu.memory_space<vmem>>, %arg3: memref<32x1xf32, #tpu.memory_space<vmem>>, %arg4: memref<1x32x128xf32, #tpu.memory_space<vmem>>, %arg5: memref<1x32x128xf32, #tpu.memory_space<vmem>>) attributes {dimension_semantics = [#tpu.dimension_semantics<parallel>], iteration_bounds = array<i64: 2>, scalar_prefetch = 0 : i64, scratch_operands = 0 : i64, tpu.core_type = #tpu.core_type<tc>, window_params = [{transform_indices = @transform_0, window_bounds = array<i64: 1, 32, 130>}, {pipeline_mode = #tpu.pipeline_mode<synchronous>, transform_indices = @transform_1, window_bounds = array<i64: 3, 32, 32>}, {pipeline_mode = #tpu.pipeline_mode<synchronous>, transform_indices = @transform_2, window_bounds = array<i64: 32, 1>}, {transform_indices = @transform_3, window_bounds = array<i64: 1, 32, 128>}, {transform_indices = @transform_4, window_bounds = array<i64: 1, 32, 128>}]} {
    %c0 = arith.constant 0 : index
    %c0_0 = arith.constant 0 : index
    %c0_1 = arith.constant 0 : index
    %0 = vector.load %arg1[%c0, %c0_0, %c0_1] : memref<1x32x130xf32, #tpu.memory_space<vmem>>, vector<1x32x130xf32>
    %1 = vector.shape_cast %0 : vector<1x32x130xf32> to vector<32x130xf32>
    %cst = arith.constant 0.000000e+00 : f32
    %2 = vector.broadcast %cst : f32 to vector<32x128xf32>
    %3 = vector.extract_strided_slice %1 {offsets = [0, 0], sizes = [32, 128], strides = [1, 1]} : vector<32x130xf32> to vector<32x128xf32>
    %c0_2 = arith.constant 0 : index
    %c0_3 = arith.constant 0 : index
    %c0_4 = arith.constant 0 : index
    %4 = vector.load %arg2[%c0_2, %c0_3, %c0_4] : memref<3x32x32xf32, #tpu.memory_space<vmem>>, vector<1x32x32xf32>
    %5 = vector.shape_cast %4 : vector<1x32x32xf32> to vector<32x32xf32>
    %cst_5 = arith.constant dense<0.000000e+00> : vector<32x128xf32>
    %6 = tpu.matmul %5, %3, %cst_5 {dimension_numbers = #tpu.dot_dimension_numbers<[1], [0], [0], [1], [0, 0, 1, 1], [], []>} : vector<32x32xf32>, vector<32x128xf32>, vector<32x128xf32> -> vector<32x128xf32>
    %7 = arith.addf %2, %6 : vector<32x128xf32>
    %8 = vector.extract_strided_slice %1 {offsets = [0, 1], sizes = [32, 128], strides = [1, 1]} : vector<32x130xf32> to vector<32x128xf32>
    %c1 = arith.constant 1 : index
    %c0_6 = arith.constant 0 : index
    %c0_7 = arith.constant 0 : index
    %9 = vector.load %arg2[%c1, %c0_6, %c0_7] : memref<3x32x32xf32, #tpu.memory_space<vmem>>, vector<1x32x32xf32>
    %10 = vector.shape_cast %9 : vector<1x32x32xf32> to vector<32x32xf32>
    %cst_8 = arith.constant dense<0.000000e+00> : vector<32x128xf32>
    %11 = tpu.matmul %10, %8, %cst_8 {dimension_numbers = #tpu.dot_dimension_numbers<[1], [0], [0], [1], [0, 0, 1, 1], [], []>} : vector<32x32xf32>, vector<32x128xf32>, vector<32x128xf32> -> vector<32x128xf32>
    %12 = arith.addf %7, %11 : vector<32x128xf32>
    %13 = vector.extract_strided_slice %1 {offsets = [0, 2], sizes = [32, 128], strides = [1, 1]} : vector<32x130xf32> to vector<32x128xf32>
    %c2 = arith.constant 2 : index
    %c0_9 = arith.constant 0 : index
    %c0_10 = arith.constant 0 : index
    %14 = vector.load %arg2[%c2, %c0_9, %c0_10] : memref<3x32x32xf32, #tpu.memory_space<vmem>>, vector<1x32x32xf32>
    %15 = vector.shape_cast %14 : vector<1x32x32xf32> to vector<32x32xf32>
    %cst_11 = arith.constant dense<0.000000e+00> : vector<32x128xf32>
    %16 = tpu.matmul %15, %13, %cst_11 {dimension_numbers = #tpu.dot_dimension_numbers<[1], [0], [0], [1], [0, 0, 1, 1], [], []>} : vector<32x32xf32>, vector<32x128xf32>, vector<32x128xf32> -> vector<32x128xf32>
    %17 = arith.addf %12, %16 : vector<32x128xf32>
    %c0_12 = arith.constant 0 : index
    %c0_13 = arith.constant 0 : index
    %18 = vector.load %arg3[%c0_12, %c0_13] : memref<32x1xf32, #tpu.memory_space<vmem>>, vector<32x1xf32>
    %19 = vector.broadcast %18 : vector<32x1xf32> to vector<32x128xf32>
    %20 = arith.addf %17, %19 : vector<32x128xf32>
    %cst_14 = arith.constant 5.000000e-01 : f32
    %21 = vector.broadcast %cst_14 : f32 to vector<32x128xf32>
    %22 = arith.mulf %21, %20 : vector<32x128xf32>
    %cst_15 = arith.constant 0.707106769 : f32
    %23 = vector.broadcast %cst_15 : f32 to vector<32x128xf32>
    %24 = arith.mulf %20, %23 : vector<32x128xf32>
    %25 = math.absf %24 : vector<32x128xf32>
    %cst_16 = arith.constant 0.327591091 : f32
    %26 = vector.broadcast %cst_16 : f32 to vector<32x128xf32>
    %27 = arith.mulf %26, %25 : vector<32x128xf32>
    %cst_17 = arith.constant 1.000000e+00 : f32
    %28 = vector.broadcast %cst_17 : f32 to vector<32x128xf32>
    %29 = arith.addf %28, %27 : vector<32x128xf32>
    %cst_18 = arith.constant 1.000000e+00 : f32
    %30 = vector.broadcast %cst_18 : f32 to vector<32x128xf32>
    %31 = arith.divf %30, %29 : vector<32x128xf32>
    %cst_19 = arith.constant 1.06140542 : f32
    %32 = vector.broadcast %cst_19 : f32 to vector<32x128xf32>
    %33 = arith.mulf %32, %31 : vector<32x128xf32>
    %cst_20 = arith.constant -1.45315206 : f32
    %34 = vector.broadcast %cst_20 : f32 to vector<32x128xf32>
    %35 = arith.addf %33, %34 : vector<32x128xf32>
    %36 = arith.mulf %35, %31 : vector<32x128xf32>
    %cst_21 = arith.constant 1.42141378 : f32
    %37 = vector.broadcast %cst_21 : f32 to vector<32x128xf32>
    %38 = arith.addf %36, %37 : vector<32x128xf32>
    %39 = arith.mulf %38, %31 : vector<32x128xf32>
    %cst_22 = arith.constant -0.284496725 : f32
    %40 = vector.broadcast %cst_22 : f32 to vector<32x128xf32>
    %41 = arith.addf %39, %40 : vector<32x128xf32>
    %42 = arith.mulf %41, %31 : vector<32x128xf32>
    %cst_23 = arith.constant 0.254829586 : f32
    %43 = vector.broadcast %cst_23 : f32 to vector<32x128xf32>
    %44 = arith.addf %42, %43 : vector<32x128xf32>
    %45 = arith.mulf %44, %31 : vector<32x128xf32>
    %46 = arith.mulf %25, %25 : vector<32x128xf32>
    %cst_24 = arith.constant 0.000000e+00 : f32
    %47 = vector.broadcast %cst_24 : f32 to vector<32x128xf32>
    %48 = arith.subf %47, %46 : vector<32x128xf32>
    %49 = math.exp %48 : vector<32x128xf32>
    %50 = arith.mulf %45, %49 : vector<32x128xf32>
    %cst_25 = arith.constant 1.000000e+00 : f32
    %51 = vector.broadcast %cst_25 : f32 to vector<32x128xf32>
    %52 = arith.subf %51, %50 : vector<32x128xf32>
    %cst_26 = arith.constant 0.000000e+00 : f32
    %53 = vector.broadcast %cst_26 : f32 to vector<32x128xf32>
    %54 = arith.cmpf oge, %24, %53 : vector<32x128xf32>
    %cst_27 = arith.constant 0.000000e+00 : f32
    %55 = vector.broadcast %cst_27 : f32 to vector<32x128xf32>
    %56 = arith.subf %55, %52 : vector<32x128xf32>
    %57 = arith.select %54, %52, %56 : vector<32x128xi1>, vector<32x128xf32>
    %cst_28 = arith.constant 1.000000e+00 : f32
    %58 = vector.broadcast %cst_28 : f32 to vector<32x128xf32>
    %59 = arith.addf %58, %57 : vector<32x128xf32>
    %60 = arith.mulf %22, %59 : vector<32x128xf32>
    %c0_29 = arith.constant 0 : index
    %c0_30 = arith.constant 0 : index
    %c0_31 = arith.constant 0 : index
    %61 = vector.load %arg4[%c0_29, %c0_30, %c0_31] : memref<1x32x128xf32, #tpu.memory_space<vmem>>, vector<1x32x128xf32>
    %62 = vector.shape_cast %61 : vector<1x32x128xf32> to vector<32x128xf32>
    %63 = arith.addf %60, %62 : vector<32x128xf32>
    %c0_32 = arith.constant 0 : index
    %c0_33 = arith.constant 0 : index
    %c0_34 = arith.constant 0 : index
    %64 = vector.load %arg5[%c0_32, %c0_33, %c0_34] : memref<1x32x128xf32, #tpu.memory_space<vmem>>, vector<1x32x128xf32>
    %65 = vector.shape_cast %64 : vector<1x32x128xf32> to vector<32x128xf32>
    %66 = vector.shape_cast %63 : vector<32x128xf32> to vector<1x32x128xf32>
    tpu.vector_store %arg5[%c0_32, %c0_33, %c0_34], %66 {strides = array<i32>} : memref<1x32x128xf32, #tpu.memory_space<vmem>>, vector<1x32x128xf32>,
    return
  }
  func.func @transform_0(%arg0: i32) -> (i32, i32, i32) {
    %c0_i32 = arith.constant 0 : i32
    %c0_i32_0 = arith.constant 0 : i32
    %c0_i32_1 = arith.constant 0 : i32
    return %arg0, %c0_i32, %c0_i32_0 : i32, i32, i32
  }
  func.func @transform_1(%arg0: i32) -> (i32, i32, i32) {
    %c0_i32 = arith.constant 0 : i32
    %c0_i32_0 = arith.constant 0 : i32
    %c0_i32_1 = arith.constant 0 : i32
    %c0_i32_2 = arith.constant 0 : i32
    return %c0_i32, %c0_i32_0, %c0_i32_1 : i32, i32, i32
  }
  func.func @transform_2(%arg0: i32) -> (i32, i32) {
    %c0_i32 = arith.constant 0 : i32
    %c0_i32_0 = arith.constant 0 : i32
    %c0_i32_1 = arith.constant 0 : i32
    return %c0_i32, %c0_i32_0 : i32, i32
  }
  func.func @transform_3(%arg0: i32) -> (i32, i32, i32) {
    %c0_i32 = arith.constant 0 : i32
    %c0_i32_0 = arith.constant 0 : i32
    %c0_i32_1 = arith.constant 0 : i32
    return %arg0, %c0_i32, %c0_i32_0 : i32, i32, i32
  }
  func.func @transform_4(%arg0: i32) -> (i32, i32, i32) {
    %c0_i32 = arith.constant 0 : i32
    %c0_i32_0 = arith.constant 0 : i32
    %c0_i32_1 = arith.constant 0 : i32
    return %arg0, %c0_i32, %c0_i32_0 : i32, i32, i32
  }
}

</mosaic_0001>

<bundles_post_ra>
// kernel: tpu_custom_call.1
= control target key start
LH: loop header
LB: loop body
LE: loop exit
PB: predicated region body
PF: predicated region fallthrough
CT: control target
= control target key end

     0   :  { %9 = vsyncpa [#allocation3], 0  ;;  %s1620_s0 = inlined_call_operand.hbm [shape: f32[2,32,130], index: 0, kind: input, shape index: {}]   ;;  %s1621_s1 = inlined_call_operand.hbm [shape: f32[3,32,32], index: 1, kind: input, shape index: {}]   ;;  %s1622_s2 = inlined_call_operand.vmem [shape: f32[32,1], index: 2, kind: input, shape index: {}]   ;;  %s1623_s3 = inlined_call_operand.hbm [shape: f32[2,32,128], index: 3, kind: input, shape index: {}]   ;;  %s1624_s4 = inlined_call_operand.hbm [shape: f32[2,32,128], index: 4, kind: output, shape index: {}]  }
   0x1   :  { %11 = vsyncpa [#allocation3 + $0x1], 0 }
   0x2   :  { %12 = vsyncpa [#allocation6], 0 }
   0x3   :  { %13 = vsyncpa [#allocation4], 0 }
   0x4   :  { %15 = vsyncpa [#allocation4 + $0x1], 0  ;;  %s1301_s15 = smov 0   ;;  %s1303_s16 = smov 0  }
   0x5   :  { %s1305_s17 = smov 0   ;;  %s1307_s18 = smov 0  }
   0x6 LB: > { %s1322_s19 = sadd.s32 1, %s1261_s18   ;;  %s28_s20 = sadd.s32 1, %s1257_s17  ;;  %s1261_s18 = sphi %s1307_s18, %s1645_s18   ;;  %s1257_s17 = sphi %s1305_s17, %s1644_s17   ;;  %s1253_s16 = sphi %s1303_s16, %s1643_s16   ;;  %s1249_s15 = sphi %s1301_s15, %s1642_s15  }
   0x7   : > { %s25_s21 = ssub.s32 %s1261_s18, %s1322_s19  ;;  %p35_p0 = scmp.ne.s32.totalorder %s1257_s17, %s1253_s16 }
   0x8   : > { %p26_p1 = scmp.eq.s32.totalorder %s25_s21, 0  ;;  %p36_p2 = scmp.eq.s32.totalorder %s1261_s18, 0 }
   0x9   : > { %p1044_p4 = scmp.lt.s32.totalorder %s1261_s18, 2  ;;  %s175_s23 = sand.u32 1, %s1261_s18  }
   0xa   : > { %s1333_s22 = scalar_select %p26_p1, %s1257_s17, %s28_s20  }
   0xb   : > { %p37_p5 = por %p36_p2, %p35_p0  ;;  %s177_s24 = sand.u32 1, %s1257_s17  }
   0xc   : > { %s913_s25 = sshll.u32 %s177_s24, 6  ;;  %s941_s26 = sshll.u32 %s1261_s18, 10 }
   0xd   : > { %s1346_s29 = scalar_lea.hbm %s1620_s0, %s941_s26  ;;  %s179_s30 = scalar_lea.vmem [#allocation2], %s913_s25 }
   0xe   : > { %s186_s5 = sshll.u32 %s179_s30, 4  ;;  %p1348_p6 = pnand %p1044_p4, %p37_p5  ;;  %s1352_s5 = int_to_ptr.vmem [resolvable:$true] %s186_s5 }
   0xf   : > { %s1354_s7 = scalar_lea.sflag [#allocation3], %s175_s23  ;;  %s1107_s8 = scalar_lea.hbm %s1346_s29, 1024 }
  0x10   : > { %p1108_p7 = scmp.ne.s32.totalorder %s1346_s29, %s1107_s8  ;;  %p1109_p8 = pneg %p1348_p6 }
  0x11   : > { %s1112_s11 = scalar_lea.hbm %s1620_s0, 2048  ;;  %p1113_p11 = scmp.lt.s32.totalorder %s1346_s29, %s1620_s0 }
  0x12   : > { %p1110_p9 = pnand %p1109_p8, %p1108_p7  ;;  %p1114_p12 = scmp.lt.s32.totalorder %s1112_s11, %s1107_s8 }
  0x14   : > { %p1111_p10 = pneg %p1110_p9  ;;  %p1115_p13 = por %p1114_p12, %p1113_p11 }
  0x16   : > { %p1116_p1 = pnand %p1115_p13, %p1111_p10 }
  0x18   : > { %1119 = shalt.err (!%p1116_p1)
}
  0x19   : > { %s1120_s14 = scalar_lea.vmem %s1352_s5, 1024  ;;  %s1263_s20 = smov [#allocation2]  }
  0x1a   : > { %p1121_p2 = scmp.ne.s32.totalorder %s1352_s5, %s1120_s14  ;;  %s1125_s21 = sshll.u32 %s1263_s20, 4  ;;  %s1126_s21 = int_to_ptr.vmem [resolvable:$false] %s1125_s21 }
  0x1b   : > { %s1127_s23 = scalar_lea.vmem %s1126_s21, 2048  ;;  %p1128_p7 = scmp.lt.s32.totalorder %s1352_s5, %s1126_s21 }
  0x1c   : > { %p1123_p4 = pnand %p1121_p2, %p1109_p8  ;;  %p1129_p9 = scmp.lt.s32.totalorder %s1127_s23, %s1120_s14 }
  0x1e   : > { %p1124_p5 = pneg %p1123_p4  ;;  %p1130_p3 = por %p1129_p9, %p1128_p7 }
  0x20   : > { %p1131_p11 = pnand %p1130_p3, %p1124_p5 }
  0x22   : > { %1134 = shalt.err (!%p1131_p11)
}
  0x23   : > { %s1264_s25 = smov 256   ;;  %s1265_s26 = smov 16  }
  0x24   : > { %1035 = dma.hbm_to_vmem [thread:$0]  (!%p1348_p6), %s1346_s29, 1024, %s1352_s5, %s1354_s7, %s1264_s25, %s1264_s25, %s1265_s26  }
  0x25   : > { %s916_s27 = sshll.u32 %s177_s24, 5  ;;  %s1384_s8 = sadd.s32 4294967295, %s1261_s18  }
  0x26   : > { %s200_s28 = scalar_lea.vmem [#allocation7], %s916_s27  ;;  %s909_s9 = sadd.s32 4294967294, %s1261_s18  }
  0x27   : > { %s207_s30 = sshll.u32 %s200_s28, 4  ;;  %p41_p3 = scmp.ne.s32.totalorder %s1253_s16, %s1249_s15  ;;  %s1419_s30 = int_to_ptr.vmem [resolvable:$true] %s207_s30 }
  0x28   : > { %p1625_p10 = scmp.eq.s32.totalorder %s1384_s8, 0  ;;  %p133_p12 = scmp.eq.s32.totalorder %s1384_s8, 1 }
  0x29   : > { %p139_p13 = scmp.eq.s32.totalorder %s909_s9, 1  ;;  %p910_p1 = scmp.ge.s32.totalorder %s1261_s18, 1 }
  0x2a   : > { %p1394_p2 = por %p1625_p10, %p41_p3  ;;  %p1401_p4 = por %p133_p12, %p35_p0 }
  0x2b   : > { %p1405_p5 = por %p139_p13, %p41_p3  ;;  %p146_p7 = scmp.lt.s32.totalorder %s1261_s18, 3 }
  0x2c   : > { %s1630_s29 = scalar_select %p1394_p2, 1, 0 }
  0x2d   : > { %s1631_s24 = scalar_select %p1401_p4, 1, 0 }
  0x2e   : > { %s1632_s5 = scalar_select %p1405_p5, 1, 0 }
  0x2f   : > { %p1410_p9 = pnand %p910_p1, %p146_p7  ;;  %s1266_s11 = smov [#allocation5]  }
  0x30   : > { %s158_s12 = sshll.u32 %s1266_s11, 4  ;;  %s942_s13 = sshll.u32 %s1261_s18, 9  ;;  %s1414_s12 = int_to_ptr.vmem [resolvable:$true] %s158_s12 }
  0x31   : > { %s1633_s10 = scalar_select %p1410_p9, 1, 0 }
  0x32   : > { %p1028_p11 = pneg %p1410_p9  ;;  %s1430_s23 = scalar_lea.hbm %s1623_s3, %s942_s13 }
  0x33   : > { %s1135_s25 = scalar_lea.hbm %s1430_s23, 512  ;;  %s1140_s28 = scalar_lea.hbm %s1623_s3, 1024 }
  0x34   : > { %p1423_p0 = pnand %p1028_p11, %p1625_p10  ;;  %p1136_p3 = scmp.ne.s32.totalorder %s1430_s23, %s1135_s25 }
  0x35   : > { %p1141_p1 = scmp.lt.s32.totalorder %s1430_s23, %s1623_s3  ;;  %p1142_p7 = scmp.lt.s32.totalorder %s1140_s28, %s1135_s25 }
  0x36   : > { %p1138_p12 = pnand %p1136_p3, %p1109_p8 }
  0x37   : > { %p1143_p11 = por %p1142_p7, %p1141_p1 }
  0x38   : > { %p1139_p13 = pneg %p1138_p12 }
  0x3a   : > { %p1144_p10 = pnand %p1143_p11, %p1139_p13 }
  0x3c   : > { %1147 = shalt.err (!%p1144_p10)
}
  0x3d   : > { %s1148_s13 = scalar_lea.vmem %s1419_s30, 512  ;;  %s1267_s20 = smov [#allocation7]  }
  0x3e   : > { %p1149_p5 = scmp.ne.s32.totalorder %s1419_s30, %s1148_s13  ;;  %s1153_s21 = sshll.u32 %s1267_s20, 4  ;;  %s1154_s21 = int_to_ptr.vmem [resolvable:$false] %s1153_s21 }
  0x3f   : > { %s1155_s26 = scalar_lea.vmem %s1154_s21, 1024  ;;  %p1156_p4 = scmp.lt.s32.totalorder %s1419_s30, %s1154_s21 }
  0x40   : > { %p1151_p3 = pnand %p1149_p5, %p1109_p8  ;;  %p1157_p2 = scmp.lt.s32.totalorder %s1155_s26, %s1148_s13 }
  0x42   : > { %p1152_p12 = pneg %p1151_p3  ;;  %p1158_p9 = por %p1157_p2, %p1156_p4 }
  0x44   : > { %p1159_p1 = pnand %p1158_p9, %p1152_p12 }
  0x46   : > { %1162 = shalt.err (!%p1159_p1)
}
  0x47   : > { %s1268_s25 = smov 128   ;;  %s1269_s27 = smov 8  }
  0x48   : > { %1038 = dma.hbm_to_vmem [thread:$0]  (!%p1348_p6), %s1430_s23, 512, %s1419_s30, %s1354_s7, %s1268_s25, %s1268_s25, %s1269_s27  }
  0x49   : > { %p1165_p8 = pneg %p1423_p0  ;;  %s1174_s28 = scalar_lea.vmem %s1414_s12, 1536 }
  0x4a   : > { %p1175_p10 = scmp.ne.s32.totalorder %s1414_s12, %s1174_s28  ;;  %p1182_p4 = scmp.lt.s32.totalorder %s1414_s12, %s1414_s12 }
  0x4b   : > { %p1183_p9 = scmp.lt.s32.totalorder %s1174_s28, %s1174_s28 }
  0x4c   : > { %p1177_p5 = pnand %p1175_p10, %p1165_p8 }
  0x4d   : > { %p1184_p13 = por %p1183_p9, %p1182_p4 }
  0x4e   : > { %p1178_p2 = pneg %p1177_p5 }
  0x50   : > { %p1185_p7 = pnand %p1184_p13, %p1178_p2 }
  0x52   : > { %1188 = shalt.err (!%p1185_p7)
}
  0x53   : > { %1031 = dma.hbm_to_vmem [thread:$0]  (!%p1423_p0), %s1621_s1, 1536, %s1414_s12, [#allocation6], %s1268_s25, %s1268_s25, %s1269_s27  }
  0x54   : > { %p1635_p6 = scmp.ne.s32.totalorder %s1633_s10, 0 }
  0x55   : > { %s221_s6 = sand.u32 (!%p1635_p6), 1, %s1384_s8   ;;  %s1471_s7 = sand.u32 (!%p1635_p6), 1, %s1253_s16  }
  0x56   : > { %219 = sbr.rel (%p1635_p6) target bundleno = 512 (0x200), region = 36  ;;  %s920_s30 = sshll.u32 (!%p1635_p6), %s1471_s7, 6 }
  0x57   : > { %s222_s23 = scalar_lea.sflag (!%p1635_p6), [#allocation3], %s221_s6  ;;  %s1474_s13 = scalar_lea.vmem (!%p1635_p6), [#allocation2], %s920_s30 }
  0x58   : > { %p1636_p11 = scmp.ne.s32.totalorder (!%p1635_p6), %s1630_s29, 0 }
  0x5b   : > { %1232 = dma.done.wait (%p1636_p11), %s222_s23, 1024  }
  0x5c   : > { %1234 = vsyncadd (%p1636_p11), %s222_s23, 4294966272  ;;  %p1637_p0 = scmp.eq.s32.totalorder %s1384_s8, 0 }
  0x5e   : > { %1236 = dma.done.wait (%p1637_p0), [#allocation6], 1536   ;;  %p1638_p3 = pmov %p1637_p0 }
  0x5f   : > { %s922_s10 = sshll.u32 %s1471_s7, 5 }
  0x60   : > { %1238 = vsyncadd (%p1638_p3), [#allocation6], 4294965760  ;;  %s1487_s12 = scalar_lea.vmem [#allocation7], %s922_s10 }
  0x61   : > { %1240 = dma.done.wait (%p1636_p11), %s222_s23, 512  }
  0x62   : > { %1242 = vsyncadd (%p1636_p11), %s222_s23, 4294966784  ;;  %v274_v0 = vld [vmem:[%s1474_s13 + $0x30] sm:$0xff]  ;;  %v272_v1 = vld [vmem:[%s1474_s13 + $0x20] sm:$0xff]  ;;  %s1270_s14 = smov 127   ;;  %vm318_vm0 = vcmask 261120   ;;  %s1271_s29 = smov 126  }
  0x63   : > { %305 = vrot.lane.b32.xlu0 %v274_v0, %s1270_s14  ;;  %301 = vrot.lane.b32.xlu1 %v272_v1, %s1270_s14  ;;  %v275_v2 = vld [vmem:[%s1474_s13 + $0x38] sm:$0xff]  ;;  %v273_v3 = vld [vmem:[%s1474_s13 + $0x28] sm:$0xff]  ;;  %v281_v4 = vld [vmem:[#allocation5 + $0x20] sm:$0xff]  ;;  %v1272_v14 = vmov 0   ;;  %vm309_vm1 = vcmask 1039360   ;;  %vm534_vm2 = vcmask 1031168  }
  0x64   : > { %982 = vmatprep.subr.mxu1 %v274_v0  ;;  %v276_v5 = vld [vmem:[#allocation5] sm:$0xff]  ;;  %v271_v6 = vld [vmem:[%s1474_s13 + $0x18] sm:$0xff]  ;;  %v270_v7 = vld [vmem:[%s1474_s13 + $0x10] sm:$0xff]  ;;  %976 = vmatprep.mubr.msk.f32.mxu0 %vm318_vm0, %v281_v4  ;;  %s267_s6 = scalar_lea.vmem [#allocation8], %s922_s10  ;;  %s943_s30 = sshll.u32 %s1384_s8, 9 }
  0x65   : > { %983 = vmatpush3.msra.mxu1 %v274_v0  ;;  %990 = vmatprep.mubr.msk.f32.mxu1 %vm318_vm0, %v276_v5  ;;  %v268_v8 = vld [vmem:[%s1474_s13] sm:$0xff]  ;;  %v277_v9 = vld [vmem:[#allocation5 + $0x8] sm:$0xff]  ;;  %v278_v11 = vld [vmem:[#allocation5 + $0x10] sm:$0xff]  ;;  %s806_s23 = sshll.u32 %s267_s6, 4  ;;  %s793_s10 = scalar_lea.sflag [#allocation4], %s1471_s7  ;;  %s1577_s23 = int_to_ptr.vmem [resolvable:$true] %s806_s23 }
  0x66   : > { %984 = vmatprep.subr.mxu1 %v272_v1  ;;  %v269_v10 = vld [vmem:[%s1474_s13 + $0x8] sm:$0xff]  ;;  %v279_v12 = vld [vmem:[#allocation5 + $0x18] sm:$0xff]  ;;  %v516_v13 = vld [vmem:[#allocation5 + $0x50] sm:$0xff]  ;;  %1090 = vset.pattern.permute.xlu1 %v1272_v14  ;;  %s1189_s8 = scalar_lea.vmem %s1577_s23, 512  ;;  %p1639_p1 = scmp.ne.s32.totalorder %s1631_s24, 0 }
  0x67   : > { %307 = vrot.lane.b32.xlu0 %v275_v2, %s1270_s14  ;;  %303 = vrot.lane.b32.xlu1 %v273_v3, %s1270_s14  ;;  %v645_v15 = vld [vmem:[%s1622_s2 + $0x8] sm:$0xff]  ;;  %v644_v16 = vld [vmem:[%s1622_s2] sm:$0xff]  ;;  %v283_v32 = vld [vmem:[#allocation5 + $0x30] sm:$0xff]  ;;  %p1190_p12 = scmp.ne.s32.totalorder %s1577_s23, %s1189_s8 }
  0x68   : > { %985 = vmatpush3.msra.mxu1 %v272_v1  ;;  %1089 = vset.pattern.permute.xlu0 %v1272_v14  ;;  %v646_v17 = vld [vmem:[%s1622_s2 + $0x10] sm:$0xff]  ;;  %v647_v18 = vld [vmem:[%s1622_s2 + $0x18] sm:$0xff]  ;;  %v282_v31 = vld [vmem:[#allocation5 + $0x28] sm:$0xff] }
  0x69   : > { %986 = vmatprep.subr.mxu1 %v270_v7  ;;  %v284_v36 = vld [vmem:[#allocation5 + $0x38] sm:$0xff]  ;;  %v514_v37 = vld [vmem:[#allocation5 + $0x40] sm:$0xff]  ;;  %v515_v47 = vld [vmem:[#allocation5 + $0x48] sm:$0xff]  ;;  %p1191_p8 = pnand %p1190_p12, %p1639_p1 }
  0x6a   : > { %987 = vmatpush3.msra.mxu1 %v270_v7  ;;  %v517_v48 = vld [vmem:[#allocation5 + $0x58] sm:$0xff] }
  0x6b   : > { %299 = vrot.lane.b32.xlu1 %v271_v6, %s1270_s14  ;;  %297 = vrot.lane.b32.xlu0 %v270_v7, %s1270_s14  ;;  %p1192_p10 = pneg %p1191_p8 }
  0x6c   : > { %988 = vmatprep.subr.mxu1 %v268_v8 }
  0x6d   : > { %989 = vmatpush3.msra.mxu1 %v268_v8 }
  0x6e   : > { %991 = vmatmul.mubr.msk.f32.vlgmr.msra.gmra.mxu1 %vm318_vm0, %v277_v9 }
  0x6f   : > { %295 = vrot.lane.b32.xlu1 %v269_v10, %s1270_s14  ;;  %293 = vrot.lane.b32.xlu0 %v268_v8, %s1270_s14 }
  0x70   : > { %993 = vmatprep.mubr.msk.f32.mxu1 %vm318_vm0, %v278_v11 }
  0x72   : > { %994 = vmatmul.mubr.msk.f32.gmra.mxu1 %vm318_vm0, %v279_v12 }
  0x73   : > { %532 = vrot.lane.b32.xlu1 %v275_v2, %s1271_s29  ;;  %530 = vrot.lane.b32.xlu0 %v274_v0, %s1271_s29 }
  0x74   : > { %1007 = vmatprep.mubr.msk.f32.mxu1 %vm318_vm0, %v516_v13 }
  0x77   : > { %528 = vrot.lane.b32.xlu1 %v273_v3, %s1271_s29  ;;  %526 = vrot.lane.b32.xlu0 %v272_v1, %s1271_s29 }
  0x7b   : > { %524 = vrot.lane.b32.xlu1 %v271_v6, %s1271_s29  ;;  %522 = vrot.lane.b32.xlu0 %v270_v7, %s1271_s29 }
  0x7f   : > { %520 = vrot.lane.b32.xlu1 %v269_v10, %s1271_s29  ;;  %518 = vrot.lane.b32.xlu0 %v268_v8, %s1271_s29  ;;  %s1575_s29 = scalar_lea.hbm %s1624_s4, %s943_s30 }
  0x83   : > { %655 = vperm.xlu1 %1090, %v645_v15   ;;  %650 = vperm.xlu0 %1089, %v644_v16  }
  0x87   : > { %660 = vperm.xlu1 %1090, %v646_v17   ;;  %665 = vperm.xlu0 %1089, %v647_v18  }
  0xd5   : > { %v306_v19 = vpop.permute.xlu0 %305  ;;  %v302_v20 = vpop.permute.xlu1 %301 }
  0xd9   : > { %v308_v21 = vpop.permute.xlu0 %307  ;;  %v304_v22 = vpop.permute.xlu1 %303 }
  0xda   : > { %v313_v23 = vsel %vm309_vm1, %v306_v19, %v308_v21  ;;  %v312_v24 = vsel %vm309_vm1, %v302_v20, %v304_v22 }
  0xdb   : > { %968 = vmatprep.subr.mxu0 %v313_v23 }
  0xdc   : > { %969 = vmatpush3.msra.mxu0 %v313_v23 }
  0xdd   : > { %970 = vmatprep.subr.mxu0 %v312_v24  ;;  %v300_v25 = vpop.permute.xlu1 %299  ;;  %v298_v26 = vpop.permute.xlu0 %297 }
  0xde   : > { %971 = vmatpush3.msra.mxu0 %v312_v24  ;;  %v311_v27 = vsel %vm309_vm1, %v298_v26, %v300_v25 }
  0xdf   : > { %972 = vmatprep.subr.mxu0 %v311_v27 }
  0xe0   : > { %973 = vmatpush3.msra.mxu0 %v311_v27 }
  0xe1   : > { %v296_v28 = vpop.permute.xlu1 %295  ;;  %v294_v29 = vpop.permute.xlu0 %293 }
  0xe2   : > { %v310_v30 = vsel %vm309_vm1, %v294_v29, %v296_v28 }
  0xe3   : > { %974 = vmatprep.subr.mxu0 %v310_v30 }
  0xe4   : > { %975 = vmatpush3.msra.mxu0 %v310_v30 }
  0xe5   : > { %v533_v33 = vpop.permute.xlu1 %532  ;;  %v531_v34 = vpop.permute.xlu0 %530  ;;  %977 = vmatmul.mubr.msk.f32.vlgmr.msra.gmra.mxu0 %vm318_vm0, %v282_v31 }
  0xe6   : > { %v538_v35 = vsel %vm534_vm2, %v531_v34, %v533_v33  ;;  %979 = vmatprep.mubr.msk.f32.mxu0 %vm318_vm0, %v283_v32 }
  0xe7   : > { %996 = vmatprep.subr.mxu0 %v538_v35  ;;  %1010 = vmatprep.subr.mxu1 %v538_v35 }
  0xe8   : > { %997 = vmatpush3.msra.mxu0 %v538_v35  ;;  %1014 = vmatpush3.msra.mxu1 %v538_v35 }
  0xe9   : > { %v529_v38 = vpop.permute.xlu1 %528  ;;  %v527_v39 = vpop.permute.xlu0 %526  ;;  %980 = vmatmul.mubr.msk.f32.gmra.mxu0 %vm318_vm0, %v284_v36 }
  0xea   : > { %v537_v40 = vsel %vm534_vm2, %v527_v39, %v529_v38  ;;  %1004 = vmatprep.mubr.msk.f32.mxu0 %vm318_vm0, %v514_v37 }
  0xeb   : > { %998 = vmatprep.subr.mxu0 %v537_v40  ;;  %1011 = vmatprep.subr.mxu1 %v537_v40 }
  0xec   : > { %999 = vmatpush3.msra.mxu0 %v537_v40  ;;  %1015 = vmatpush3.msra.mxu1 %v537_v40 }
  0xed   : > { %v525_v41 = vpop.permute.xlu1 %524  ;;  %v523_v42 = vpop.permute.xlu0 %522 }
  0xee   : > { %v536_v43 = vsel %vm534_vm2, %v523_v42, %v525_v41 }
  0xef   : > { %1000 = vmatprep.subr.mxu0 %v536_v43  ;;  %1012 = vmatprep.subr.mxu1 %v536_v43 }
  0xf0   : > { %1001 = vmatpush3.msra.mxu0 %v536_v43  ;;  %1016 = vmatpush3.msra.mxu1 %v536_v43 }
  0xf1   : > { %v521_v44 = vpop.permute.xlu1 %520  ;;  %v519_v45 = vpop.permute.xlu0 %518 }
  0xf2   : > { %v535_v46 = vsel %vm534_vm2, %v519_v45, %v521_v44 }
  0xf3   : > { %1002 = vmatprep.subr.mxu0 %v535_v46  ;;  %1013 = vmatprep.subr.mxu1 %v535_v46 }
  0xf4   : > { %1003 = vmatpush3.msra.mxu0 %v535_v46  ;;  %1017 = vmatpush3.msra.mxu1 %v535_v46 }
  0xf5   : > { %1005 = vmatmul.mubr.msk.f32.vlgmr.msra.gmra.mxu0 %vm318_vm0, %v515_v47  ;;  %1008 = vmatmul.mubr.msk.f32.vlgmr.msra.gmra.mxu1 %vm318_vm0, %v517_v48 }
  0xfe   : > { %v651_v55 = vpop.permute.xlu0 %650  ;;  %v656_v60 = vpop.permute.xlu1 %655 }
 0x102   : > { %v666_v3 = vpop.permute.xlu0 %665  ;;  %v661_v11 = vpop.permute.xlu1 %660 }
 0x12e   : > { %v992_v50 = vpop.f32.mrf.mxu1 }
 0x130   : > { %v494_v52 = vpop.f32.mrf.mxu1 }
 0x132   : > { %v995_v54 = vpop.f32.mrf.mxu1 }
 0x134   : > { %v504_v57 = vpop.f32.mrf.mxu1 }
 0x1a5   : > { %v978_v49 = vpop.f32.mrf.mxu0 }
 0x1a6   : > { %v500_v58 = vadd.f32 %v992_v50, %v978_v49 }
 0x1a7   : > { %v397_v51 = vpop.f32.mrf.mxu0 }
 0x1a8   : > { %v495_v63 = vadd.f32 %v494_v52, %v397_v51 }
 0x1a9   : > { %v981_v53 = vpop.f32.mrf.mxu0 }
 0x1aa   : > { %v510_v59 = vadd.f32 %v995_v54, %v981_v53 }
 0x1ab   : > { %v407_v56 = vpop.f32.mrf.mxu0 }
 0x1ac   : > { %v505_v0 = vadd.f32 %v504_v57, %v407_v56 }
 0x1b5   : > { %v1006_v61 = vpop.f32.mrf.mxu0  ;;  %v1009_v62 = vpop.f32.mrf.mxu1 }
 0x1b6   : > { %v641_v1 = vadd.f32 %v1006_v61, %v500_v58  ;;  %v643_v2 = vadd.f32 %v1009_v62, %v510_v59 }
 0x1b7   : > { %v621_v4 = vpop.f32.mrf.mxu0  ;;  %v631_v5 = vpop.f32.mrf.mxu1 }
 0x1b8   : > { %v1533_v6 = vadd.f32 %v656_v60, %v641_v1  ;;  %v1535_v7 = vadd.f32 %v666_v3, %v643_v2  ;;  %v640_v8 = vadd.f32 %v621_v4, %v495_v63  ;;  %v642_v9 = vadd.f32 %v631_v5, %v505_v0 }
 0x1ba   : > { %v1538_v10 = vmul.f32 0.70710677, %v1533_v6  ;;  %v1541_v12 = vmul.f32 0.70710677, %v1535_v7  ;;  %v1543_v13 = vadd.f32 %v651_v55, %v640_v8  ;;  %v1545_v14 = vadd.f32 %v661_v11, %v642_v9 }
 0x1bc   : > { %v681_v15 = vand.u32 2147483647, %v1538_v10  ;;  %v683_v16 = vand.u32 2147483647, %v1541_v12  ;;  %v1550_v17 = vmul.f32 0.70710677, %v1543_v13 }
 0x1bd   : > { %v1553_v18 = vmul.f32 0.70710677, %v1545_v14  ;;  %vm761_vm3 = vcmp.ge.f32.partialorder %v1538_v10, 0.0  ;;  %vm763_vm4 = vcmp.ge.f32.partialorder %v1541_v12, 0.0  ;;  %v783_v10 = vld [vmem:[%s1487_s12 + $0x18] sm:$0xff] }
 0x1be   : > { %v685_v19 = vmul.f32 0.3275911, %v681_v15  ;;  %v687_v20 = vmul.f32 0.3275911, %v683_v16  ;;  %v680_v21 = vand.u32 2147483647, %v1550_v17  ;;  %v737_v29 = vmul.f32 %v681_v15, %v681_v15 }
 0x1bf   : > { %v682_v22 = vand.u32 2147483647, %v1553_v18  ;;  %v739_v30 = vmul.f32 %v683_v16, %v683_v16  ;;  %vm760_vm5 = vcmp.ge.f32.partialorder %v1550_v17, 0.0  ;;  %vm762_vm6 = vcmp.ge.f32.partialorder %v1553_v18, 0.0 }
 0x1c0   : > { %v689_v23 = vadd.f32 1.0, %v685_v19  ;;  %v691_v24 = vadd.f32 1.0, %v687_v20  ;;  %v684_v25 = vmul.f32 0.3275911, %v680_v21  ;;  %v741_v31 = vsub.f32 0.0, %v737_v29 }
 0x1c1   : > { %v686_v26 = vmul.f32 0.3275911, %v682_v22  ;;  %v736_v32 = vmul.f32 %v680_v21, %v680_v21  ;;  %v743_v33 = vsub.f32 0.0, %v739_v30  ;;  %v738_v34 = vmul.f32 %v682_v22, %v682_v22 }
 0x1c2   : > { %1091 = vrcp.f32 %v689_v23  ;;  %v688_v27 = vadd.f32 1.0, %v684_v25  ;;  %v746_v38 = vmul.f32 1.442695, %v741_v31  ;;  %v674_v17 = vmul.f32 0.5, %v1545_v14 }
 0x1c3   : > { %1093 = vrcp.f32 %v691_v24  ;;  %v690_v28 = vadd.f32 1.0, %v686_v26  ;;  %v740_v39 = vsub.f32 0.0, %v736_v32  ;;  %v750_v41 = vmul.f32 1.442695, %v743_v33 }
 0x1c4   : > { %1095 = vrcp.f32 %v688_v27  ;;  %v742_v42 = vsub.f32 0.0, %v738_v34 }
 0x1c5   : > { %1097 = vrcp.f32 %v690_v28  ;;  %v744_v48 = vmul.f32 1.442695, %v740_v39  ;;  %v673_v39 = vmul.f32 0.5, %v1533_v6 }
 0x1c6   : > { %1099 = vpow2.f32 %v746_v38  ;;  %v748_v51 = vmul.f32 1.442695, %v742_v42  ;;  %v781_v42 = vld [vmem:[%s1487_s12 + $0x8] sm:$0xff] }
 0x1c7   : > { %1101 = vpow2.f32 %v750_v41 }
 0x1c8   : > { %1103 = vpow2.f32 %v744_v48 }
 0x1c9   : > { %1105 = vpow2.f32 %v748_v51 }
 0x1cf   : > { %v1092_v35 = vpop.eup %1091 }
 0x1d0   : > { %v1094_v36 = vpop.eup %1093  ;;  %v701_v37 = vmul.f32 1.0614054, %v1092_v35 }
 0x1d1   : > { %v703_v40 = vmul.f32 1.0614054, %v1094_v36  ;;  %v1096_v44 = vpop.eup %1095 }
 0x1d2   : > { %v705_v43 = vadd.f32 -1.4531521, %v701_v37  ;;  %v700_v47 = vmul.f32 1.0614054, %v1096_v44  ;;  %v1098_v49 = vpop.eup %1097 }
 0x1d3   : > { %v707_v45 = vadd.f32 -1.4531521, %v703_v40  ;;  %v702_v54 = vmul.f32 1.0614054, %v1098_v49  ;;  %v1100_v19 = vpop.eup %1099 }
 0x1d4   : > { %v709_v46 = vmul.f32 %v1092_v35, %v705_v43  ;;  %v704_v53 = vadd.f32 -1.4531521, %v700_v47  ;;  %v1102_v21 = vpop.eup %1101  ;;  %v675_v43 = vmul.f32 0.5, %v1535_v7 }
 0x1d5   : > { %v711_v50 = vmul.f32 %v1094_v36, %v707_v45  ;;  %v706_v58 = vadd.f32 -1.4531521, %v702_v54  ;;  %v1104_v29 = vpop.eup %1103 }
 0x1d6   : > { %v713_v52 = vadd.f32 1.4214138, %v709_v46  ;;  %v708_v57 = vmul.f32 %v1096_v44, %v704_v53  ;;  %v1106_v34 = vpop.eup %1105 }
 0x1d7   : > { %v715_v55 = vadd.f32 1.4214138, %v711_v50  ;;  %v710_v62 = vmul.f32 %v1098_v49, %v706_v58  ;;  %v672_v50 = vmul.f32 0.5, %v1543_v13 }
 0x1d8   : > { %v717_v56 = vmul.f32 %v1092_v35, %v713_v52  ;;  %v712_v61 = vadd.f32 1.4214138, %v708_v57  ;;  %v780_v52 = vld [vmem:[%s1487_s12] sm:$0xff] }
 0x1d9   : > { %v719_v59 = vmul.f32 %v1094_v36, %v715_v55  ;;  %v714_v2 = vadd.f32 1.4214138, %v710_v62 }
 0x1da   : > { %v721_v60 = vadd.f32 -0.28449672, %v717_v56  ;;  %v716_v1 = vmul.f32 %v1096_v44, %v712_v61  ;;  %v782_v56 = vld [vmem:[%s1487_s12 + $0x10] sm:$0xff]  ;;  %s1273_s12 = smov [#allocation8]  }
 0x1db   : > { %v723_v63 = vadd.f32 -0.28449672, %v719_v59  ;;  %v718_v8 = vmul.f32 %v1098_v49, %v714_v2  ;;  %s1193_s20 = sshll.u32 %s1273_s12, 4  ;;  %s1194_s20 = int_to_ptr.vmem [resolvable:$false] %s1193_s20 }
 0x1dc   : > { %v725_v0 = vmul.f32 %v1092_v35, %v721_v60  ;;  %v720_v5 = vadd.f32 -0.28449672, %v716_v1  ;;  %s1195_s21 = scalar_lea.vmem %s1194_s20, 1024  ;;  %p1196_p5 = scmp.lt.s32.totalorder %s1577_s23, %s1194_s20 }
 0x1dd   : > { %v727_v3 = vmul.f32 %v1094_v36, %v723_v63  ;;  %v722_v16 = vadd.f32 -0.28449672, %v718_v8  ;;  %p1197_p2 = scmp.lt.s32.totalorder %s1195_s21, %s1189_s8 }
 0x1de   : > { %v729_v4 = vadd.f32 0.2548296, %v725_v0  ;;  %v724_v15 = vmul.f32 %v1096_v44, %v720_v5 }
 0x1df   : > { %v731_v9 = vadd.f32 0.2548296, %v727_v3  ;;  %v726_v24 = vmul.f32 %v1098_v49, %v722_v16  ;;  %p1198_p4 = por %p1197_p2, %p1196_p5 }
 0x1e0   : > { %v733_v11 = vmul.f32 %v1092_v35, %v729_v4  ;;  %v728_v23 = vadd.f32 0.2548296, %v724_v15 }
 0x1e1   : > { %v735_v20 = vmul.f32 %v1094_v36, %v731_v9  ;;  %v730_v28 = vadd.f32 0.2548296, %v726_v24  ;;  %p1199_p9 = pnand %p1198_p4, %p1192_p10 }
 0x1e2   : > { %v753_v22 = vmul.f32 %v1100_v19, %v733_v11  ;;  %v732_v27 = vmul.f32 %v1096_v44, %v728_v23 }
 0x1e3   : > { %v755_v25 = vmul.f32 %v1102_v21, %v735_v20  ;;  %v734_v33 = vmul.f32 %v1098_v49, %v730_v28 }
 0x1e4   : > { %v757_v26 = vsub.f32 1.0, %v753_v22  ;;  %v752_v32 = vmul.f32 %v1104_v29, %v732_v27 }
 0x1e5   : > { %v759_v30 = vsub.f32 1.0, %v755_v25  ;;  %v754_v38 = vmul.f32 %v1106_v34, %v734_v33 }
 0x1e6   : > { %v765_v31 = vsub.f32 0.0, %v757_v26  ;;  %v756_v37 = vsub.f32 1.0, %v752_v32 }
 0x1e7   : > { %v767_v35 = vsub.f32 0.0, %v759_v30  ;;  %v758_v46 = vsub.f32 1.0, %v754_v38 }
 0x1e8   : > { %v769_v36 = vsel %vm761_vm3, %v757_v26, %v765_v31  ;;  %v764_v45 = vsub.f32 0.0, %v756_v37 }
 0x1e9   : > { %v773_v40 = vadd.f32 1.0, %v769_v36  ;;  %v771_v41 = vsel %vm763_vm4, %v759_v30, %v767_v35  ;;  %v766_v49 = vsub.f32 0.0, %v758_v46 }
 0x1ea   : > { %v775_v44 = vadd.f32 1.0, %v771_v41  ;;  %v768_v48 = vsel %vm760_vm5, %v756_v37, %v764_v45 }
 0x1eb   : > { %v777_v47 = vmul.f32 %v773_v40, %v673_v39  ;;  %v772_v51 = vadd.f32 1.0, %v768_v48  ;;  %v770_v53 = vsel %vm762_vm6, %v758_v46, %v766_v49 }
 0x1ec   : > { %v779_v12 = vmul.f32 %v775_v44, %v675_v43  ;;  %v774_v55 = vadd.f32 1.0, %v770_v53 }
 0x1ed   : > { %v785_v6 = vadd.f32 %v781_v42, %v777_v47  ;;  %v776_v54 = vmul.f32 %v772_v51, %v672_v50 }
 0x1ee   : > { %v787_v7 = vadd.f32 %v783_v10, %v779_v12  ;;  %v778_v57 = vmul.f32 %v774_v55, %v674_v17 }
 0x1ef   : > { %789 = vst [vmem:[%s267_s6 + $0x8] sm:$0xff] %v785_v6  ;;  %v784_v13 = vadd.f32 %v780_v52, %v776_v54 }
 0x1f0   : > { %791 = vst [vmem:[%s267_s6 + $0x18] sm:$0xff] %v787_v7  ;;  %v786_v14 = vadd.f32 %v782_v56, %v778_v57 }
 0x1f1   : > { %788 = vst [vmem:[%s267_s6] sm:$0xff] %v784_v13 }
 0x1f2   : > { %790 = vst [vmem:[%s267_s6 + $0x10] sm:$0xff] %v786_v14 }
 0x1f3   : > { %1202 = shalt.err (!%p1199_p9)
}
 0x1f4   : > { %s1203_s26 = scalar_lea.hbm %s1575_s29, 512  ;;  %s1207_s28 = scalar_lea.hbm %s1624_s4, 1024 }
 0x1f5   : > { %p1204_p13 = scmp.ne.s32.totalorder %s1575_s29, %s1203_s26  ;;  %p1208_p11 = scmp.lt.s32.totalorder %s1575_s29, %s1624_s4 }
 0x1f6   : > { %p1209_p0 = scmp.lt.s32.totalorder %s1207_s28, %s1203_s26 }
 0x1f7   : > { %p1205_p7 = pnand %p1204_p13, %p1639_p1 }
 0x1f8   : > { %p1210_p3 = por %p1209_p0, %p1208_p11 }
 0x1f9   : > { %p1206_p6 = pneg %p1205_p7 }
 0x1fb   : > { %p1211_p12 = pnand %p1210_p3, %p1206_p6 }
 0x1fd   : > { %1214 = shalt.err (!%p1211_p12)
}
 0x1fe   : > { %s1274_s6 = smov 128   ;;  %s1275_s30 = smov 8  }
 0x1ff   : > { %1026 = dma.vmem_to_hbm [thread:$0]  (%p1639_p1), %s1577_s23, 512, %s1575_s29, %s793_s10, %s1274_s6, %s1274_s6, %s1275_s30  }
 0x200 PF: > { %s821_s13 = sand.u32 1, %s1249_s15   ;;  %p1640_p8 = scmp.ne.s32.totalorder %s1632_s5, 0 }
 0x201   : > { %p1641_p10 = scmp.ge.s32.totalorder %s1261_s18, 2  ;;  %s822_s14 = scalar_lea.sflag [#allocation4], %s821_s13 }
 0x203   : > { %p1040_p5 = pnand %p1641_p10, %p1640_p8 }
 0x205   : > { %p1041_p2 = pneg %p1040_p5 }
 0x207   : > { %1244 = dma.done.wait (%p1041_p2), %s822_s14, 512  }
 0x208   : > { %1246 = vsyncadd (%p1041_p2), %s822_s14, 4294966784  ;;  %p18_p4 = scmp.ge.s32.totalorder %s1322_s19, 4   ;;  %s1642_s15 = smov %s1253_s16 }
 0x209   : > { %s1643_s16 = smov %s1257_s17  ;;  %s1644_s17 = smov %s1333_s22 }
 0x20a   : > { %s1645_s18 = smov %s1322_s19  ;;  %20 = sbr.rel (!%p18_p4) target bundleno = 6 (0x6), region = 98 }
 0x20f   :  { %827 = vsyncpa [#allocation3], 1 }
 0x210   :  { %829 = vsyncpa [#allocation3 + $0x1], 1 }
 0x211   :  { %830 = vsyncpa [#allocation6], 1 }
 0x212   :  { %831 = vsyncpa [#allocation4], 1 }
 0x213   :  { %833 = vsyncpa [#allocation4 + $0x1], 1 }

</bundles_post_ra>
